<compile_context>
chip_gen: v6e
topology: v6e:2x2x1
jax: 0.10.0
libtpu: 0.0.40
codegen_flags: <defaults>
</compile_context>

<pallas_src>
import jax
import jax.numpy as jnp
from jax.experimental import pallas as pl
from jax.experimental.pallas import tpu as pltpu

_C1 = 0.7978845608028654          # sqrt(2/pi)
_C2 = _C1 * 0.044715              # folded: sqrt(2/pi) * 0.044715


def _gelu_kernel(x_ref, o_ref):
    # One (block_rows, lanes) tile; f32 internal compute, cast back on store.
    x = x_ref[...].astype(jnp.float32)
    x2 = x * x
    inner = x * (_C1 + _C2 * x2)              # sqrt(2/pi)*(x + 0.044715*x^3)
    half_x = 0.5 * x
    o_ref[...] = (half_x + half_x * jnp.tanh(inner)).astype(o_ref.dtype)


def _round_up(a, b):
    return -(-a // b) * b


def _pick_block_rows(rows, lanes, itemsize, sublane):
    """Generation-aware row-tile choice (big tiles, even grid when possible)."""
    try:
        vmem_bytes = int(pltpu.get_tpu_info().vmem_capacity_bytes)
    except Exception:
        vmem_bytes = 64 << 20  # conservative default (v7x-sized)
    # ~8 MiB tiles on 128 MiB-VMEM chips (v5e/v6e), ~4 MiB on 64 MiB (v7x).
    tile_budget = (8 << 20) if vmem_bytes >= (96 << 20) else (4 << 20)

    br = max(sublane, (tile_budget // (lanes * itemsize)) // sublane * sublane)
    if br >= rows:
        # Whole array fits in one tile.  If there are enough rows, split into
        # two blocks so a 2-TensorCore chip shares the "parallel" grid axis.
        if rows >= 2 * sublane:
            return _round_up(-(-rows // 2), sublane)
        return rows  # single full-array block (allowed even if unaligned)
    # Tiled case: nudge the grid length to an even count for v7x megacore.
    nblocks = -(-rows // br)
    if nblocks % 2 == 1:
        br2 = _round_up(-(-rows // (nblocks + 1)), sublane)
        if br2 >= sublane and (-(-rows // br2)) % 2 == 0:
            br = br2
    return br


def gelu(x):
    """Tanh-approx GELU (same formula as the PyTorch module) for any shape."""
    orig_shape = x.shape
    total = int(x.size)
    if total == 0:
        return x

    itemsize = jnp.dtype(x.dtype).itemsize
    sublane = 8 if itemsize >= 4 else (16 if itemsize == 2 else 32)

    # ---- lane-dense 2-D slab; avoid pad/slice whenever possible -----------
    last = orig_shape[-1] if len(orig_shape) else total
    if last % 128 == 0 and 0 < last <= 8192:
        lanes = last                  # collapse leading dims: free reshape
        rows = total // lanes
        pad_elems = 0
    elif total % 128 == 0:
        lanes = 128
        rows = total // lanes
        pad_elems = 0
    else:
        lanes = 128                   # ragged tail: zero-pad (GELU(0) == 0)
        rows = -(-total // lanes)
        pad_elems = rows * lanes - total

    x_flat = x.reshape(-1)
    if pad_elems:
        x_flat = jnp.pad(x_flat, (0, pad_elems))
    x2d = x_flat.reshape(rows, lanes)

    block_rows = _pick_block_rows(rows, lanes, itemsize, sublane)
    grid = (pl.cdiv(rows, block_rows),)    # partial last block masked by Pallas

    block_bytes = block_rows * lanes * itemsize
    vmem_limit = int(min(100 << 20, max(32 << 20, 4 * block_bytes + (8 << 20))))

    n_padded = rows * lanes
    cost = pl.CostEstimate(
        flops=8 * n_padded,                # ~8 VPU ops / element (excl. tanh)
        transcendentals=n_padded,          # one tanh / element
        bytes_accessed=2 * n_padded * itemsize,
    )

    out2d = pl.pallas_call(
        _gelu_kernel,
        out_shape=jax.ShapeDtypeStruct((rows, lanes), x.dtype),
        grid=grid,
        in_specs=[pl.BlockSpec((block_rows, lanes), lambda i: (i, 0))],
        out_specs=pl.BlockSpec((block_rows, lanes), lambda i: (i, 0)),
        compiler_params=pltpu.CompilerParams(
            dimension_semantics=("parallel",),
            vmem_limit_bytes=vmem_limit,
        ),
        cost_estimate=cost,
    )(x2d)

    out_flat = out2d.reshape(-1)
    if pad_elems:
        out_flat = out_flat[:total]
    return out_flat.reshape(orig_shape)


def _reference(x):
    xf = x.astype(jnp.float32)
    c = jnp.sqrt(jnp.float32(2.0 / jnp.pi))
    out = 0.5 * xf * (1.0 + jnp.tanh(c * (xf + 0.044715 * xf ** 3)))
    return out.astype(x.dtype)


if __name__ == "__main__":
    key = jax.random.PRNGKey(0)
    k0, k1, k2 = jax.random.split(key, 3)

    # Small activation (batch=2, seq=8, hidden=32): total divides by 128
    # -> no padding, single full-array block.
    x_small = jax.random.normal(k0, (2, 8, 32), dtype=jnp.float32)
    out_small = jax.block_until_ready(gelu(x_small))
    assert out_small.shape == x_small.shape
    assert jnp.allclose(out_small, _reference(x_small), atol=1e-5, rtol=1e-4)

    # Lane-adaptive path (trailing dim multiple of 128), even 2-step grid.
    x_mid = jax.random.normal(k1, (4, 64, 256), dtype=jnp.float32)
    out_mid = jax.block_until_ready(gelu(x_mid))
    assert out_mid.shape == x_mid.shape
    assert jnp.allclose(out_mid, _reference(x_mid), atol=1e-5, rtol=1e-4)

    # bf16 path: 16-row packed sublane granule, full-array block.
    x_bf16 = jax.random.normal(k2, (4, 16, 32), dtype=jnp.bfloat16)
    out_bf16 = jax.block_until_ready(gelu(x_bf16))
    assert out_bf16.shape == x_bf16.shape
    assert jnp.allclose(out_bf16.astype(jnp.float32),
                        _reference(x_bf16).astype(jnp.float32),
                        atol=2e-2, rtol=2e-2)

    print("KERNEL_OK")
</pallas_src>

<mosaic_0001>
module attributes {stable_mosaic.version = 11 : i64} {
  func.func @_gelu_kernel(%arg0: i32, %arg1: memref<4x128xf32, #tpu.memory_space<vmem>>, %arg2: memref<4x128xf32, #tpu.memory_space<vmem>>) attributes {dimension_semantics = [#tpu.dimension_semantics<parallel>], iteration_bounds = array<i64: 1>, scalar_prefetch = 0 : i64, scratch_operands = 0 : i64, tpu.core_type = #tpu.core_type<tc>, window_params = [{transform_indices = @transform_0, window_bounds = array<i64: 4, 128>}, {transform_indices = @transform_1, window_bounds = array<i64: 4, 128>}]} {
    %c0 = arith.constant 0 : index
    %c0_0 = arith.constant 0 : index
    %0 = vector.load %arg1[%c0, %c0_0] : memref<4x128xf32, #tpu.memory_space<vmem>>, vector<4x128xf32>
    %1 = arith.mulf %0, %0 : vector<4x128xf32>
    %cst = arith.constant 0.0356774069 : f32
    %2 = vector.broadcast %cst : f32 to vector<4x128xf32>
    %3 = arith.mulf %2, %1 : vector<4x128xf32>
    %cst_1 = arith.constant 0.797884583 : f32
    %4 = vector.broadcast %cst_1 : f32 to vector<4x128xf32>
    %5 = arith.addf %4, %3 : vector<4x128xf32>
    %6 = arith.mulf %0, %5 : vector<4x128xf32>
    %cst_2 = arith.constant 5.000000e-01 : f32
    %7 = vector.broadcast %cst_2 : f32 to vector<4x128xf32>
    %8 = arith.mulf %7, %0 : vector<4x128xf32>
    %9 = math.tanh %6 : vector<4x128xf32>
    %10 = arith.mulf %8, %9 : vector<4x128xf32>
    %11 = arith.addf %8, %10 : vector<4x128xf32>
    %c0_3 = arith.constant 0 : index
    %c0_4 = arith.constant 0 : index
    %12 = vector.load %arg2[%c0_3, %c0_4] : memref<4x128xf32, #tpu.memory_space<vmem>>, vector<4x128xf32>
    tpu.vector_store %arg2[%c0_3, %c0_4], %11 {strides = array<i32>} : memref<4x128xf32, #tpu.memory_space<vmem>>, vector<4x128xf32>,
    return
  }
  func.func @transform_0(%arg0: i32) -> (i32, i32) {
    %c0_i32 = arith.constant 0 : i32
    %c0_i32_0 = arith.constant 0 : i32
    return %arg0, %c0_i32 : i32, i32
  }
  func.func @transform_1(%arg0: i32) -> (i32, i32) {
    %c0_i32 = arith.constant 0 : i32
    %c0_i32_0 = arith.constant 0 : i32
    return %arg0, %c0_i32 : i32, i32
  }
}

</mosaic_0001>

<bundles_post_ra>
// kernel: tpu_custom_call.1
= control target key start
LH: loop header
LB: loop body
LE: loop exit
PB: predicated region body
PF: predicated region fallthrough
CT: control target
= control target key end

     0   :  { %6 = vsyncpa [#allocation3], 0  ;;  %s112_s0 = inlined_call_operand.hbm [shape: f32[4,128], index: 0, kind: input, shape index: {}]   ;;  %s113_s1 = inlined_call_operand.hbm [shape: f32[4,128], index: 1, kind: output, shape index: {}]  }
   0x1   :  { %7 = vsyncpa [#allocation4], 0  ;;  %s94_s6 = smov [#allocation2]  }
   0x2   :  { %s14_s7 = sshll.u32 %s94_s6, 4  ;;  %s15_s7 = int_to_ptr.vmem [resolvable:$true] %s14_s7 }
   0x3   :  { %s58_s8 = scalar_lea.vmem %s15_s7, 64  ;;  %p63_p1 = scmp.lt.s32.totalorder %s15_s7, %s15_s7 }
   0x4   :  { %p59_p0 = scmp.ne.s32.totalorder %s15_s7, %s58_s8  ;;  %p64_p2 = scmp.lt.s32.totalorder %s58_s8, %s58_s8 }
   0x6   :  { %p65_p3 = por %p64_p2, %p63_p1 }
   0x8   :  { %p66_p4 = pnand %p65_p3, %p59_p0 }
   0xa   :  { %69 = shalt.err (!%p66_p4)
}
   0xb   :  { %17 = dma.hbm_to_vmem [thread:$0]  %s112_s0, 64, %s15_s7, [#allocation3]  }
   0xc   :  { %90 = dma.done.wait [#allocation3], 64  }
   0xd   :  { %91 = vsyncadd [#allocation3], 4294967232  ;;  %v21_v0 = vld [vmem:[#allocation2] sm:$0xf]  ;;  %s95_s11 = smov [#allocation5]  }
   0xe   :  { %v22_v1 = vmul.f32 %v21_v0, %v21_v0  ;;  %v26_v5 = vmul.f32 0.5, %v21_v0  ;;  %s37_s12 = sshll.u32 %s95_s11, 4  ;;  %s38_s12 = int_to_ptr.vmem [resolvable:$true] %s37_s12 }
   0xf   :  { %s70_s13 = scalar_lea.vmem %s38_s12, 64  ;;  %p75_p6 = scmp.lt.s32.totalorder %s38_s12, %s38_s12 }
  0x10   :  { %v23_v2 = vmul.f32 0.035677407, %v22_v1  ;;  %p71_p5 = scmp.ne.s32.totalorder %s38_s12, %s70_s13  ;;  %p76_p7 = scmp.lt.s32.totalorder %s70_s13, %s70_s13 }
  0x12   :  { %v24_v3 = vadd.f32 0.7978846, %v23_v2  ;;  %p77_p8 = por %p76_p7, %p75_p6 }
  0x14   :  { %v25_v4 = vmul.f32 %v24_v3, %v21_v0  ;;  %p78_p9 = pnand %p77_p8, %p71_p5 }
  0x16   :  { %48 = vtanh.f32 %v25_v4 }
  0x23   :  { %v49_v6 = vpop.eup %48 }
  0x24   :  { %v28_v7 = vmul.f32 %v49_v6, %v26_v5 }
  0x26   :  { %v29_v8 = vadd.f32 %v28_v7, %v26_v5 }
  0x28   :  { %30 = vst [vmem:[#allocation5] sm:$0xf] %v29_v8 }
  0x29   :  { %81 = shalt.err (!%p78_p9)
}
  0x2a   :  { %40 = dma.vmem_to_hbm [thread:$0]  %s38_s12, 64, %s113_s1, [#allocation4]  }
  0x2b   :  { %92 = dma.done.wait [#allocation4], 64  }
  0x2c   :  { %93 = vsyncadd [#allocation4], 4294967232 }
  0x2d   :  { %44 = vsyncpa [#allocation3], 1 }
  0x2e   :  { %45 = vsyncpa [#allocation4], 1 }

</bundles_post_ra>
